<compile_context>
chip_gen: v7x
topology: tpu7x:2x2x1
jax: 0.10.0
libtpu: 0.0.40
codegen_flags: <defaults>
</compile_context>

<pallas_src>
import functools

import jax
import jax.numpy as jnp
from jax.experimental import pallas as pl
from jax.experimental.pallas import tpu as pltpu


def _alpha_loss_kernel(inv_n_value, inv_batch,
                       y_value_ref, value_ref, y_policy_ref, policy_ref,
                       out_ref, acc_ref):
    step = pl.program_id(0)

    @pl.when(step == 0)
    def _init():
        acc_ref[0] = jnp.float32(0.0)

    # ---- value MSE partial: sum of squared diffs over this lane-dense tile ----
    # value blocks are (1, 1, TB); index the leading dim -> (1, TB) 2-D tile.
    yv = y_value_ref[0].astype(jnp.float32)
    v = value_ref[0].astype(jnp.float32)
    d = yv - v
    val_sq_sum = jnp.sum(d * d)

    # ---- policy partial: single full-tile sum (no intermediate (B,) array) ----
    yp = y_policy_ref[...].astype(jnp.float32)
    p = policy_ref[...].astype(jnp.float32)
    prod_sum = jnp.sum(p * yp)

    # inv_* are static trace-time constants (folded reciprocals).
    acc_ref[0] = acc_ref[0] + (val_sq_sum * inv_n_value - prod_sum * inv_batch)

    @pl.when(step == pl.num_programs(0) - 1)
    def _finalize():
        out_ref[0, 0] = acc_ref[0]


def alpha_loss(y_value, value, y_policy, policy, *, batch_tile=None):
    """Pallas TPU implementation of AlphaLoss.forward. Returns a scalar f32."""
    B, A = y_policy.shape
    assert policy.shape == (B, A)

    # Flatten the value tensors (lane-dense 1-D view of the (B,1) columns).
    yv = jnp.reshape(y_value, (-1,))
    v = jnp.reshape(value, (-1,))
    n_value = int(yv.shape[0])  # number of value elements (== B for (B,1))

    # ---- choose a batch tile: multiple of 8, ~2 MiB per policy input tile ----
    if batch_tile is None:
        row_bytes = max(1, A * jnp.dtype(y_policy.dtype).itemsize)
        tb = (2 * 1024 * 1024) // row_bytes
        tb = max(8, min(1024, tb))
    else:
        tb = max(8, int(batch_tile))
    tb = max(8, (tb // 8) * 8)
    if B <= tb:
        tb = ((B + 7) // 8) * 8  # single tile, rounded up to a sublane multiple

    g = -(-B // tb)          # number of grid steps
    b_pad = g * tb

    # Zero-pad batch (zero rows contribute 0 to both partial sums).
    if b_pad != B:
        pad = b_pad - B
        y_policy = jnp.pad(y_policy, ((0, pad), (0, 0)))
        policy = jnp.pad(policy, ((0, pad), (0, 0)))
    if b_pad != n_value:
        yv = jnp.pad(yv, (0, b_pad - n_value))
        v = jnp.pad(v, (0, b_pad - n_value))

    # Lane-dense 3-D view so each grid step gets a (1, 1, TB) block.
    yv3 = jnp.reshape(yv, (g, 1, tb))
    v3 = jnp.reshape(v, (g, 1, tb))

    kernel = functools.partial(
        _alpha_loss_kernel, float(1.0 / n_value), float(1.0 / B))

    out = pl.pallas_call(
        kernel,
        out_shape=jax.ShapeDtypeStruct((1, 1), jnp.float32),
        grid_spec=pltpu.PrefetchScalarGridSpec(
            num_scalar_prefetch=0,
            grid=(g,),
            in_specs=[
                pl.BlockSpec((1, 1, tb), lambda i: (i, 0, 0)),   # y_value
                pl.BlockSpec((1, 1, tb), lambda i: (i, 0, 0)),   # value
                pl.BlockSpec((tb, A), lambda i: (i, 0)),         # y_policy
                pl.BlockSpec((tb, A), lambda i: (i, 0)),         # policy
            ],
            # Scalar output stays resident in SMEM across the reduction axis;
            # written only in the final grid step.
            out_specs=pl.BlockSpec((1, 1), lambda i: (0, 0),
                                   memory_space=pltpu.MemorySpace.SMEM),
            scratch_shapes=[pltpu.SMEM((1,), jnp.float32)],
        ),
        compiler_params=pltpu.CompilerParams(
            dimension_semantics=("arbitrary",)),
    )(yv3, v3, y_policy, policy)
    return out[0, 0]


def alpha_loss_ref(y_value, value, y_policy, policy):
    """Plain-JAX reference matching the PyTorch semantics (f32 math)."""
    yv = y_value.astype(jnp.float32)
    v = value.astype(jnp.float32)
    yp = y_policy.astype(jnp.float32)
    p = policy.astype(jnp.float32)
    value_loss = jnp.mean((yv - v) ** 2)
    policy_loss = -jnp.mean(jnp.sum(p * yp, axis=1))
    return value_loss + policy_loss


if __name__ == "__main__":
    key = jax.random.PRNGKey(0)

    # ---- test 1: small f32 shapes (B=8, A=128), single grid step ----
    k1, k2, k3, k4, key = jax.random.split(key, 5)
    B, A = 8, 128
    value = jax.random.uniform(k1, (B, 1), jnp.float32, minval=-1.0, maxval=1.0)
    y_value = jax.random.uniform(k2, (B, 1), jnp.float32, minval=-1.0, maxval=1.0)
    policy = jax.nn.softmax(jax.random.normal(k3, (B, A), jnp.float32), axis=1)
    y_policy = jax.nn.log_softmax(jax.random.normal(k4, (B, A), jnp.float32), axis=1)

    out = jax.block_until_ready(alpha_loss(y_value, value, y_policy, policy))
    ref = alpha_loss_ref(y_value, value, y_policy, policy)
    assert jnp.allclose(out, ref, rtol=1e-5, atol=1e-5), (out, ref)

    # ---- test 2: non-aligned batch + multi-step grid (B=200, tile=64 -> G=4) ----
    k1, k2, k3, k4, key = jax.random.split(key, 5)
    B2, A2 = 200, 128
    value2 = jax.random.uniform(k1, (B2, 1), jnp.float32, minval=-1.0, maxval=1.0)
    y_value2 = jax.random.uniform(k2, (B2, 1), jnp.float32, minval=-1.0, maxval=1.0)
    policy2 = jax.nn.softmax(jax.random.normal(k3, (B2, A2), jnp.float32), axis=1)
    y_policy2 = jax.nn.log_softmax(jax.random.normal(k4, (B2, A2), jnp.float32), axis=1)

    out2 = jax.block_until_ready(
        alpha_loss(y_value2, value2, y_policy2, policy2, batch_tile=64))
    ref2 = alpha_loss_ref(y_value2, value2, y_policy2, policy2)
    assert jnp.allclose(out2, ref2, rtol=1e-5, atol=1e-5), (out2, ref2)

    # ---- test 3: bf16 inputs stay bf16 in HBM, cast to f32 inside the kernel ----
    out3 = jax.block_until_ready(
        alpha_loss(y_value2.astype(jnp.bfloat16), value2.astype(jnp.bfloat16),
                   y_policy2.astype(jnp.bfloat16), policy2.astype(jnp.bfloat16)))
    ref3 = alpha_loss_ref(y_value2.astype(jnp.bfloat16), value2.astype(jnp.bfloat16),
                          y_policy2.astype(jnp.bfloat16), policy2.astype(jnp.bfloat16))
    assert jnp.allclose(out3, ref3, rtol=2e-2, atol=2e-2), (out3, ref3)

    print("KERNEL_OK")
</pallas_src>

<mosaic_0001>
module attributes {stable_mosaic.version = 11 : i64} {
  func.func @_alpha_loss_kernel(%arg0: i32, %arg1: memref<1x1x8xf32, #tpu.memory_space<vmem>>, %arg2: memref<1x1x8xf32, #tpu.memory_space<vmem>>, %arg3: memref<8x128xf32, #tpu.memory_space<vmem>>, %arg4: memref<8x128xf32, #tpu.memory_space<vmem>>, %arg5: memref<1x1xf32, #tpu.memory_space<smem>>, %arg6: memref<1xf32, #tpu.memory_space<smem>>) attributes {dimension_semantics = [#tpu.dimension_semantics<arbitrary>], iteration_bounds = array<i64: 1>, scalar_prefetch = 0 : i64, scratch_operands = 1 : i64, tpu.core_type = #tpu.core_type<tc>, window_params = [{transform_indices = @transform_0, window_bounds = array<i64: 1, 1, 8>}, {transform_indices = @transform_1, window_bounds = array<i64: 1, 1, 8>}, {transform_indices = @transform_2, window_bounds = array<i64: 8, 128>}, {transform_indices = @transform_3, window_bounds = array<i64: 8, 128>}, {transform_indices = @transform_4, window_bounds = array<i64: 1, 1>}]} {
    %c0_i32 = arith.constant 0 : i32
    %0 = arith.cmpi eq, %arg0, %c0_i32 : i32
    %1 = arith.extui %0 : i1 to i32
    %c0_i32_0 = arith.constant 0 : i32
    %2 = arith.cmpi ne, %1, %c0_i32_0 : i32
    scf.if %2 {
      %cst_17 = arith.constant 0.000000e+00 : f32
      %c0_18 = arith.constant 0 : index
      %29 = memref.load %arg6[%c0_18] : memref<1xf32, #tpu.memory_space<smem>>
      memref.store %cst_17, %arg6[%c0_18] : memref<1xf32, #tpu.memory_space<smem>>
    } else {
    }
    %c0 = arith.constant 0 : index
    %c0_1 = arith.constant 0 : index
    %c0_2 = arith.constant 0 : index
    %3 = vector.load %arg1[%c0, %c0_1, %c0_2] : memref<1x1x8xf32, #tpu.memory_space<vmem>>, vector<1x1x8xf32>
    %4 = vector.shape_cast %3 : vector<1x1x8xf32> to vector<1x8xf32>
    %c0_3 = arith.constant 0 : index
    %c0_4 = arith.constant 0 : index
    %c0_5 = arith.constant 0 : index
    %5 = vector.load %arg2[%c0_3, %c0_4, %c0_5] : memref<1x1x8xf32, #tpu.memory_space<vmem>>, vector<1x1x8xf32>
    %6 = vector.shape_cast %5 : vector<1x1x8xf32> to vector<1x8xf32>
    %7 = arith.subf %4, %6 : vector<1x8xf32>
    %8 = arith.mulf %7, %7 : vector<1x8xf32>
    %9 = vector.shape_cast %8 : vector<1x8xf32> to vector<1x1x8xf32>
    %cst = arith.constant dense<0.000000e+00> : vector<1xf32>
    %10 = vector.multi_reduction <add>, %9, %cst [1, 2] : vector<1x1x8xf32> to vector<1xf32>
    %11 = vector.shape_cast %10 : vector<1xf32> to vector<1x1x1xf32>
    %12 = vector.extract %11[0, 0, 0] : f32 from vector<1x1x1xf32>
    %c0_6 = arith.constant 0 : index
    %c0_7 = arith.constant 0 : index
    %13 = vector.load %arg3[%c0_6, %c0_7] : memref<8x128xf32, #tpu.memory_space<vmem>>, vector<8x128xf32>
    %c0_8 = arith.constant 0 : index
    %c0_9 = arith.constant 0 : index
    %14 = vector.load %arg4[%c0_8, %c0_9] : memref<8x128xf32, #tpu.memory_space<vmem>>, vector<8x128xf32>
    %15 = arith.mulf %14, %13 : vector<8x128xf32>
    %16 = vector.shape_cast %15 : vector<8x128xf32> to vector<1x8x128xf32>
    %cst_10 = arith.constant dense<0.000000e+00> : vector<1xf32>
    %17 = vector.multi_reduction <add>, %16, %cst_10 [1, 2] : vector<1x8x128xf32> to vector<1xf32>
    %18 = vector.shape_cast %17 : vector<1xf32> to vector<1x1x1xf32>
    %19 = vector.extract %18[0, 0, 0] : f32 from vector<1x1x1xf32>
    %c0_11 = arith.constant 0 : index
    %20 = memref.load %arg6[%c0_11] : memref<1xf32, #tpu.memory_space<smem>>
    %cst_12 = arith.constant 1.250000e-01 : f32
    %21 = arith.mulf %12, %cst_12 : f32
    %cst_13 = arith.constant 1.250000e-01 : f32
    %22 = arith.mulf %19, %cst_13 : f32
    %23 = arith.subf %21, %22 : f32
    %24 = arith.addf %20, %23 : f32
    %c0_14 = arith.constant 0 : index
    %25 = memref.load %arg6[%c0_14] : memref<1xf32, #tpu.memory_space<smem>>
    memref.store %24, %arg6[%c0_14] : memref<1xf32, #tpu.memory_space<smem>>
    %c0_i32_15 = arith.constant 0 : i32
    %26 = arith.cmpi eq, %arg0, %c0_i32_15 : i32
    %27 = arith.extui %26 : i1 to i32
    %c0_i32_16 = arith.constant 0 : i32
    %28 = arith.cmpi ne, %27, %c0_i32_16 : i32
    scf.if %28 {
      %c0_17 = arith.constant 0 : index
      %29 = memref.load %arg6[%c0_17] : memref<1xf32, #tpu.memory_space<smem>>
      %c0_18 = arith.constant 0 : index
      %c0_19 = arith.constant 0 : index
      %30 = memref.load %arg5[%c0_18, %c0_19] : memref<1x1xf32, #tpu.memory_space<smem>>
      memref.store %29, %arg5[%c0_18, %c0_19] : memref<1x1xf32, #tpu.memory_space<smem>>
    } else {
    }
    return
  }
  func.func @transform_0(%arg0: i32) -> (i32, i32, i32) {
    %c0_i32 = arith.constant 0 : i32
    %c0_i32_0 = arith.constant 0 : i32
    %c0_i32_1 = arith.constant 0 : i32
    return %arg0, %c0_i32, %c0_i32_0 : i32, i32, i32
  }
  func.func @transform_1(%arg0: i32) -> (i32, i32, i32) {
    %c0_i32 = arith.constant 0 : i32
    %c0_i32_0 = arith.constant 0 : i32
    %c0_i32_1 = arith.constant 0 : i32
    return %arg0, %c0_i32, %c0_i32_0 : i32, i32, i32
  }
  func.func @transform_2(%arg0: i32) -> (i32, i32) {
    %c0_i32 = arith.constant 0 : i32
    %c0_i32_0 = arith.constant 0 : i32
    return %arg0, %c0_i32 : i32, i32
  }
  func.func @transform_3(%arg0: i32) -> (i32, i32) {
    %c0_i32 = arith.constant 0 : i32
    %c0_i32_0 = arith.constant 0 : i32
    return %arg0, %c0_i32 : i32, i32
  }
  func.func @transform_4(%arg0: i32) -> (i32, i32) {
    %c0_i32 = arith.constant 0 : i32
    %c0_i32_0 = arith.constant 0 : i32
    %c0_i32_1 = arith.constant 0 : i32
    return %c0_i32, %c0_i32_0 : i32, i32
  }
}

</mosaic_0001>

<bundles_post_ra>
// kernel: tpu_custom_call.1
= control target key start
LH: loop header
LB: loop body
LE: loop exit
PB: predicated region body
PF: predicated region fallthrough
CT: control target
= control target key end

     0   :  { %9 = vsyncpa [#allocation4], 0  ;;  %s240_s0 = inlined_call_operand.hbm [shape: f32[1,1,8], index: 0, kind: input, shape index: {}]   ;;  %s241_s1 = inlined_call_operand.vmem [shape: f32[1,1,8], index: 1, kind: input, shape index: {}]   ;;  %s242_s2 = inlined_call_operand.hbm [shape: f32[8,128], index: 2, kind: input, shape index: {}]   ;;  %s243_s3 = inlined_call_operand.vmem [shape: f32[8,128], index: 3, kind: input, shape index: {}]   ;;  %s244_s4 = inlined_call_operand.hbm [shape: f32[1,1], index: 4, kind: output, shape index: {}]  }
   0x1   :  { %10 = vsyncpa [#allocation7], 0 }
   0x2   :  { %11 = vsyncpa [#allocation5], 0  ;;  %s170_s15 = smov [#allocation3]   ;;  %s171_s17 = smov [#allocation6]  }
   0x3   :  { %s18_s16 = sshll.u32 %s170_s15, 4  ;;  %s30_s18 = sshll.u32 %s171_s17, 4  ;;  %s19_s16 = int_to_ptr.vmem [resolvable:$true] %s18_s16  ;;  %s31_s18 = int_to_ptr.vmem [resolvable:$true] %s30_s18 }
   0x4   :  { %s110_s21 = scalar_lea.hbm %s240_s0, 16 }
   0x5   :  { %p111_p0 = scmp.ne.s32.totalorder %s240_s0, %s110_s21  ;;  %p114_p1 = scmp.lt.u32.totalorder %s110_s21, %s240_s0 }
   0x7   :  { %p116_p2 = pnand %p114_p1, %p111_p0 }
   0x9   :  { %119 = shalt.err (!%p116_p2)
}
   0xa   :  { %s120_s26 = scalar_lea.vmem %s19_s16, 16  ;;  %s124_s27 = scalar_lea.vmem %s19_s16, 32 }
   0xb   :  { %p121_p3 = scmp.ne.s32.totalorder %s19_s16, %s120_s26  ;;  %p125_p4 = scmp.lt.s32.totalorder %s19_s16, %s19_s16 }
   0xc   :  { %p126_p5 = scmp.lt.s32.totalorder %s124_s27, %s120_s26 }
   0xe   :  { %p127_p6 = por %p126_p5, %p125_p4 }
  0x10   :  { %p128_p7 = pnand %p127_p6, %p121_p3 }
  0x12   :  { %131 = shalt.err (!%p128_p7)
}
  0x13   :  { %21 = dma.hbm_to_vmem [thread:$0]  %s240_s0, 16, %s19_s16, [#allocation4]  }
  0x14   :  { %s132_s6 = scalar_lea.hbm %s242_s2, 128 }
  0x15   :  { %p133_p8 = scmp.ne.s32.totalorder %s242_s2, %s132_s6  ;;  %p136_p9 = scmp.lt.u32.totalorder %s132_s6, %s242_s2 }
  0x17   :  { %p138_p10 = pnand %p136_p9, %p133_p8 }
  0x19   :  { %141 = shalt.err (!%p138_p10)
}
  0x1a   :  { %s142_s11 = scalar_lea.vmem %s31_s18, 128  ;;  %p147_p12 = scmp.lt.s32.totalorder %s31_s18, %s31_s18 }
  0x1b   :  { %p143_p11 = scmp.ne.s32.totalorder %s31_s18, %s142_s11  ;;  %p148_p13 = scmp.lt.s32.totalorder %s142_s11, %s142_s11 }
  0x1d   :  { %p149_p0 = por %p148_p13, %p147_p12 }
  0x1f   :  { %p150_p1 = pnand %p149_p0, %p143_p11 }
  0x21   :  { %153 = shalt.err (!%p150_p1)
}
  0x22   :  { %33 = dma.hbm_to_vmem [thread:$0]  %s242_s2, 128, %s31_s18, [#allocation7]  }
  0x23   :  { %164 = dma.done.wait [#allocation4], 16  }
  0x24   :  { %165 = vsyncadd [#allocation4], 4294967280 }
  0x25   :  { %166 = dma.done.wait [#allocation7], 128  }
  0x26   :  { %167 = vsyncadd [#allocation7], 4294967168  ;;  %v48_v0 = vld [vmem:[#allocation3] sm:$0x1]  ;;  %v49_v1 = vld [vmem:[%s241_s1] sm:$0x1] }
  0x27   :  { %v50_v2 = vsub.f32 %v48_v0, %v49_v1  ;;  %vm52_vm0 = vcmask 57344   ;;  %v63_v4 = vld [vmem:[#allocation6] sm:$0xff]  ;;  %v64_v5 = vld [vmem:[%s243_s3] sm:$0xff]  ;;  %s154_s21 = scalar_lea.hbm %s244_s4, 16 }
  0x28   :  { %v65_v7 = vmul.f32 %v64_v5, %v63_v4  ;;  %p155_p2 = scmp.ne.s32.totalorder %s244_s4, %s154_s21  ;;  %p158_p3 = scmp.lt.u32.totalorder %s154_s21, %s244_s4 }
  0x29   :  { %v51_v3 = vmul.f32 %v50_v2, %v50_v2 }
  0x2a   :  { %p160_p4 = pnand %p158_p3, %p155_p2 }
  0x2b   :  { %v53_v6 = vsel %vm52_vm0, %v51_v3, 0.0 }
  0x2c   :  { %54 = vadd.xlane.f32.xlu0 %v53_v6 }
  0x30   :  { %66 = vadd.xlane.f32.xlu0 %v65_v7 }
  0xb9   :  { %v55_v8 = vpop.xlane.xlu0 %54 }
  0xba   :  { %v56_v9 = vrot.slane %v55_v8, 4 }
  0xbc   :  { %v57_v10 = vadd.f32 %v56_v9, %v55_v8 }
  0xbd   :  { %v67_v11 = vpop.xlane.xlu0 %66 }
  0xbe   :  { %v58_v12 = vrot.slane %v57_v10, 2  ;;  %v68_v13 = vrot.slane %v67_v11, 4 }
  0xc0   :  { %v69_v14 = vadd.f32 %v68_v13, %v67_v11  ;;  %v59_v15 = vadd.f32 %v58_v12, %v57_v10 }
  0xc2   :  { %v70_v16 = vrot.slane %v69_v14, 2  ;;  %v60_v17 = vrot.slane %v59_v15, 1 }
  0xc4   :  { %v71_v18 = vadd.f32 %v70_v16, %v69_v14  ;;  %v61_v19 = vadd.f32 %v60_v17, %v59_v15 }
  0xc6   :  { %103 = vpush %v61_v19  ;;  %v72_v20 = vrot.slane %v71_v18, 1 }
  0xc8   :  { %v73_v21 = vadd.f32 %v72_v20, %v71_v18 }
  0xca   :  { %105 = vpush %v73_v21 }
  0xf7   :  { %s104_s1 = spop %103 }
  0xf8   :  { %s76_s2 = smul.f32 0.125, %s104_s1 }
  0xfb   :  { %s106_s3 = spop %105 }
  0xfc   :  { %s77_s17 = smul.f32 0.125, %s106_s3 }
  0xfe   :  { %s78_s18 = ssub.f32 %s76_s2, %s77_s17 }
 0x100   :  { %87 = sst [smem:[#allocation8]] %s78_s18 }
 0x101   :  { %163 = shalt.err (!%p160_p4)
}
 0x102   :  { %s172_s26 = smov [#allocation8]  }
 0x103   :  { %95 = dma.smem_to_hbm %s172_s26, 16, %s244_s4, [#allocation5]  }
 0x104   :  { %168 = dma.done.wait [#allocation5], 16  }
 0x105   :  { %169 = vsyncadd [#allocation5], 4294967280 }
 0x106   :  { %99 = sfence }
 0x107   :  { %100 = vsyncpa [#allocation4], 1 }
 0x108   :  { %101 = vsyncpa [#allocation7], 1 }
 0x109   :  { %102 = vsyncpa [#allocation5], 1 }

</bundles_post_ra>
